<compile_context>
chip_gen: v7x
topology: tpu7x:2x2x1
jax: 0.10.0
libtpu: 0.0.40
codegen_flags: <defaults>
</compile_context>

<pallas_src>
import math

import jax
import jax.numpy as jnp
from jax.experimental import pallas as pl
from jax.experimental.pallas import tpu as pltpu


def _round_up(n, m):
    return ((n + m - 1) // m) * m


def _adv_net_kernel(x_ref, w1_ref, b1_ref, w2_ref, b2_ref, w3_ref, b3_ref, y_ref):
    """Fused 3-layer MLP on one batch tile: relu(x@W1+b1) @W2+b2 relu -> VPU dot w3 -> sigmoid."""
    # In-kernel bf16 cast of the f32 x tile (VPU work, hidden under MXU slack).
    x = x_ref[...].astype(jnp.bfloat16)                    # (TB, Fp)

    # Layer 1 + ReLU (dropout1 is identity at inference). f32 accumulate on MXU.
    h1 = jnp.dot(x, w1_ref[...], preferred_element_type=jnp.float32) + b1_ref[...]
    h1 = jnp.maximum(h1, 0.0)

    # Layer 2 + ReLU (dropout2 is identity at inference).
    h2 = jnp.dot(h1.astype(jnp.bfloat16), w2_ref[...],
                 preferred_element_type=jnp.float32) + b2_ref[...]
    h2 = jnp.maximum(h2, 0.0)                              # (TB, Hp) f32

    # Layer 3 (H -> 1): VPU multiply + lane (XLU) reduction instead of a 1-wide
    # MXU matmul; b3 is a scalar.
    logit = jnp.sum(h2 * w3_ref[...], axis=-1, keepdims=True) + b3_ref[0, 0]

    # Numerically stable sigmoid: exp(-|z|) never overflows.
    ez = jnp.exp(-jnp.abs(logit))
    inv = 1.0 / (1.0 + ez)
    y_ref[...] = jnp.where(logit >= 0.0, inv, ez * inv)


def adversarial_network_forward(x, params, *, batch_tile=512):
    """Run the fused AdversarialNetwork forward pass on TPU via Pallas.

    x:       [B, in_feature] float32
    params:  dict with w1 [F,H], b1 [1,H], w2 [H,H], b2 [1,H], w3 [H,1], b3 [1,1]
             (weights stored [in, out]; NOTE: PyTorch nn.Linear stores [out, in],
             transpose when loading torch checkpoints).
    returns: [B, 1] float32 in [0, 1]
    """
    B, F = x.shape
    H = params["w1"].shape[1]

    # MXU/lane-friendly padded sizes; zero padding is exact through the ReLUs.
    F_pad = _round_up(F, 128)
    H_pad = _round_up(H, 128)
    # TB: multiple of 16 (bf16 sublane packing); default 512 (multiple of 256)
    # fills the MXU M dimension and amortizes per-grid-step overhead.
    TB = min(batch_tile, _round_up(B, 16))
    B_pad = _round_up(B, TB)

    # x stays f32 and is passed through untouched unless ragged (avoids a full
    # extra HBM read+write pass over the batch just to pad/cast it).
    if (B_pad, F_pad) != (B, F):
        x_p = jnp.zeros((B_pad, F_pad), x.dtype).at[:B, :F].set(x)
    else:
        x_p = x

    # bf16 matmul weights; f32 biases / w3 (w3 is consumed on the VPU).
    w1 = jnp.zeros((F_pad, H_pad), jnp.bfloat16).at[:F, :H].set(params["w1"].astype(jnp.bfloat16))
    b1 = jnp.zeros((1, H_pad), jnp.float32).at[:, :H].set(params["b1"])
    w2 = jnp.zeros((H_pad, H_pad), jnp.bfloat16).at[:H, :H].set(params["w2"].astype(jnp.bfloat16))
    b2 = jnp.zeros((1, H_pad), jnp.float32).at[:, :H].set(params["b2"])
    w3 = jnp.zeros((1, H_pad), jnp.float32).at[:, :H].set(params["w3"].reshape(1, H))
    b3 = params["b3"].reshape(1, 1).astype(jnp.float32)

    grid = (B_pad // TB,)

    # Explicit VMEM budget: weights (worst case double-buffered), double-buffered
    # x/out tiles, f32 h1/h2 intermediates, +25% headroom; capped at ~90% of
    # physical VMEM (64 MiB/TC on v7x, 128 MiB on v5e/v6e), floored at 32 MiB.
    weight_bytes = w1.size * 2 + w2.size * 2 + (b1.size + b2.size + w3.size) * 4
    tile_bytes = TB * F_pad * 4 + TB * 4            # x tile (f32) + out tile
    interm_bytes = 2 * TB * H_pad * 4               # h1, h2 f32
    needed = int((2 * weight_bytes + 2 * tile_bytes + interm_bytes) * 1.25)
    try:
        vmem_cap = int(pltpu.get_tpu_info().vmem_capacity_bytes)
    except Exception:
        vmem_cap = 64 * 1024 * 1024                 # conservative (v7x per-TC)
    vmem_limit = min(max(needed, 32 * 1024 * 1024), int(vmem_cap * 0.9))

    cost = pl.CostEstimate(
        flops=2 * B_pad * (F_pad * H_pad + H_pad * H_pad + H_pad),
        transcendentals=B_pad,
        bytes_accessed=(x_p.size * 4 + w1.size * 2 + w2.size * 2
                        + (b1.size + b2.size + w3.size + b3.size) * 4
                        + B_pad * 4),
    )

    def build(optimized):
        if optimized:
            # Single-buffer the grid-invariant operands; b3 as an SMEM scalar.
            def inv_spec(shape):
                return pl.BlockSpec(shape, lambda i: (0, 0),
                                    pipeline_mode=pl.Buffered(1))
            b3_spec = pl.BlockSpec(memory_space=pltpu.MemorySpace.SMEM)
        else:
            # Previously-validated conservative specs (default double-buffering).
            def inv_spec(shape):
                return pl.BlockSpec(shape, lambda i: (0, 0))
            b3_spec = pl.BlockSpec((1, 1), lambda i: (0, 0))

        return pl.pallas_call(
            _adv_net_kernel,
            out_shape=jax.ShapeDtypeStruct((B_pad, 1), jnp.float32),
            grid=grid,
            in_specs=[
                pl.BlockSpec((TB, F_pad), lambda i: (i, 0)),   # x: tiled over batch
                inv_spec((F_pad, H_pad)),                      # w1: VMEM-resident
                inv_spec((1, H_pad)),                          # b1
                inv_spec((H_pad, H_pad)),                      # w2
                inv_spec((1, H_pad)),                          # b2
                inv_spec((1, H_pad)),                          # w3 (row vector)
                b3_spec,                                       # b3 scalar
            ],
            out_specs=pl.BlockSpec((TB, 1), lambda i: (i, 0)),
            compiler_params=pltpu.CompilerParams(
                dimension_semantics=("parallel",),
                vmem_limit_bytes=vmem_limit,
            ),
            cost_estimate=cost,
        )

    args = (x_p, w1, b1, w2, b2, w3, b3)
    try:
        out = build(True)(*args)
    except Exception:
        # Some JAX builds reject pipeline_mode / SMEM-operand specs at the
        # top-level pallas_call; fall back to the known-good configuration.
        out = build(False)(*args)

    return out[:B]


def init_adversarial_network_params(key, in_feature, hidden_size):
    """Deterministic init matching the module: xavier_normal_ weights, zero biases.

    Weights are stored [in, out] so the kernel computes x @ W + b.
    (PyTorch nn.Linear stores [out, in]; transpose when importing torch weights.)
    """
    k1, k2, k3 = jax.random.split(key, 3)

    def xavier_normal(k, fan_in, fan_out):
        std = math.sqrt(2.0 / (fan_in + fan_out))
        return std * jax.random.normal(k, (fan_in, fan_out), dtype=jnp.float32)

    return {
        "w1": xavier_normal(k1, in_feature, hidden_size),
        "b1": jnp.zeros((1, hidden_size), jnp.float32),
        "w2": xavier_normal(k2, hidden_size, hidden_size),
        "b2": jnp.zeros((1, hidden_size), jnp.float32),
        "w3": xavier_normal(k3, hidden_size, 1),
        "b3": jnp.zeros((1, 1), jnp.float32),
    }


if __name__ == "__main__":
    # TODO(synk): GRL coeff / grl_hook only modify gradients (backward pass) and
    # have no forward-pass Pallas equivalent; dropout is identity at inference.
    key = jax.random.PRNGKey(0)
    k_x, k_p = jax.random.split(key)

    B, IN_FEATURE, HIDDEN = 8, 32, 32
    x = jax.random.normal(k_x, (B, IN_FEATURE), dtype=jnp.float32)
    params = init_adversarial_network_params(k_p, IN_FEATURE, HIDDEN)

    y = adversarial_network_forward(x, params)
    y = jax.block_until_ready(y)

    # Reference using the same bf16 rounding of the matmul operands as the kernel.
    xb = x.astype(jnp.bfloat16).astype(jnp.float32)
    w1b = params["w1"].astype(jnp.bfloat16).astype(jnp.float32)
    w2b = params["w2"].astype(jnp.bfloat16).astype(jnp.float32)
    h1 = jnp.maximum(xb @ w1b + params["b1"], 0.0)
    h2 = jnp.maximum(h1 @ w2b + params["b2"], 0.0)
    y_ref = jax.nn.sigmoid(h2 @ params["w3"] + params["b3"])

    assert y.shape == (B, 1)
    assert bool(jnp.all(jnp.isfinite(y)))
    assert bool(jnp.all((y >= 0.0) & (y <= 1.0)))
    assert jnp.allclose(y, y_ref, atol=5e-3, rtol=5e-3)

    print("KERNEL_OK")
</pallas_src>

<mosaic_0001>
module attributes {stable_mosaic.version = 11 : i64} {
  func.func @_adv_net_kernel(%arg0: i32, %arg1: memref<16x128xf32, #tpu.memory_space<vmem>>, %arg2: memref<128x128xbf16, #tpu.memory_space<vmem>>, %arg3: memref<1x128xf32, #tpu.memory_space<vmem>>, %arg4: memref<128x128xbf16, #tpu.memory_space<vmem>>, %arg5: memref<1x128xf32, #tpu.memory_space<vmem>>, %arg6: memref<1x128xf32, #tpu.memory_space<vmem>>, %arg7: memref<1x1xf32, #tpu.memory_space<smem>>, %arg8: memref<16x1xf32, #tpu.memory_space<vmem>>) attributes {dimension_semantics = [#tpu.dimension_semantics<parallel>], iteration_bounds = array<i64: 1>, scalar_prefetch = 0 : i64, scratch_operands = 0 : i64, tpu.core_type = #tpu.core_type<tc>, window_params = [{transform_indices = @transform_0, window_bounds = array<i64: 16, 128>}, {pipeline_mode = #tpu.pipeline_mode<synchronous>, transform_indices = @transform_1, window_bounds = array<i64: 128, 128>}, {pipeline_mode = #tpu.pipeline_mode<synchronous>, transform_indices = @transform_2, window_bounds = array<i64: 1, 128>}, {pipeline_mode = #tpu.pipeline_mode<synchronous>, transform_indices = @transform_3, window_bounds = array<i64: 128, 128>}, {pipeline_mode = #tpu.pipeline_mode<synchronous>, transform_indices = @transform_4, window_bounds = array<i64: 1, 128>}, {pipeline_mode = #tpu.pipeline_mode<synchronous>, transform_indices = @transform_5, window_bounds = array<i64: 1, 128>}, {transform_indices = @transform_6, window_bounds = array<i64: 1, 1>}, {transform_indices = @transform_7, window_bounds = array<i64: 16, 1>}]} {
    %c0 = arith.constant 0 : index
    %c0_0 = arith.constant 0 : index
    %0 = vector.load %arg1[%c0, %c0_0] : memref<16x128xf32, #tpu.memory_space<vmem>>, vector<16x128xf32>
    %1 = arith.truncf %0 : vector<16x128xf32> to vector<16x128xbf16>
    %c0_1 = arith.constant 0 : index
    %c0_2 = arith.constant 0 : index
    %2 = vector.load %arg2[%c0_1, %c0_2] : memref<128x128xbf16, #tpu.memory_space<vmem>>, vector<128x128xbf16>
    %cst = arith.constant dense<0.000000e+00> : vector<16x128xf32>
    %3 = tpu.matmul %1, %2, %cst {dimension_numbers = #tpu.dot_dimension_numbers<[1], [0], [0], [1], [0, 0, 1, 1], [], []>} : vector<16x128xbf16>, vector<128x128xbf16>, vector<16x128xf32> -> vector<16x128xf32>
    %c0_3 = arith.constant 0 : index
    %c0_4 = arith.constant 0 : index
    %4 = vector.load %arg3[%c0_3, %c0_4] : memref<1x128xf32, #tpu.memory_space<vmem>>, vector<1x128xf32>
    %5 = vector.broadcast %4 : vector<1x128xf32> to vector<16x128xf32>
    %6 = arith.addf %3, %5 : vector<16x128xf32>
    %cst_5 = arith.constant 0.000000e+00 : f32
    %7 = vector.broadcast %cst_5 : f32 to vector<16x128xf32>
    %8 = arith.maximumf %6, %7 : vector<16x128xf32>
    %9 = arith.truncf %8 : vector<16x128xf32> to vector<16x128xbf16>
    %c0_6 = arith.constant 0 : index
    %c0_7 = arith.constant 0 : index
    %10 = vector.load %arg4[%c0_6, %c0_7] : memref<128x128xbf16, #tpu.memory_space<vmem>>, vector<128x128xbf16>
    %cst_8 = arith.constant dense<0.000000e+00> : vector<16x128xf32>
    %11 = tpu.matmul %9, %10, %cst_8 {dimension_numbers = #tpu.dot_dimension_numbers<[1], [0], [0], [1], [0, 0, 1, 1], [], []>} : vector<16x128xbf16>, vector<128x128xbf16>, vector<16x128xf32> -> vector<16x128xf32>
    %c0_9 = arith.constant 0 : index
    %c0_10 = arith.constant 0 : index
    %12 = vector.load %arg5[%c0_9, %c0_10] : memref<1x128xf32, #tpu.memory_space<vmem>>, vector<1x128xf32>
    %13 = vector.broadcast %12 : vector<1x128xf32> to vector<16x128xf32>
    %14 = arith.addf %11, %13 : vector<16x128xf32>
    %cst_11 = arith.constant 0.000000e+00 : f32
    %15 = vector.broadcast %cst_11 : f32 to vector<16x128xf32>
    %16 = arith.maximumf %14, %15 : vector<16x128xf32>
    %c0_12 = arith.constant 0 : index
    %c0_13 = arith.constant 0 : index
    %17 = vector.load %arg6[%c0_12, %c0_13] : memref<1x128xf32, #tpu.memory_space<vmem>>, vector<1x128xf32>
    %18 = vector.broadcast %17 : vector<1x128xf32> to vector<16x128xf32>
    %19 = arith.mulf %16, %18 : vector<16x128xf32>
    %cst_14 = arith.constant dense<0.000000e+00> : vector<16xf32>
    %20 = vector.multi_reduction <add>, %19, %cst_14 [1] : vector<16x128xf32> to vector<16xf32>
    %21 = vector.shape_cast %20 : vector<16xf32> to vector<16x1xf32>
    %c0_15 = arith.constant 0 : index
    %c0_16 = arith.constant 0 : index
    %22 = memref.load %arg7[%c0_15, %c0_16] : memref<1x1xf32, #tpu.memory_space<smem>>
    %23 = vector.broadcast %22 : f32 to vector<16x1xf32>
    %24 = arith.addf %21, %23 : vector<16x1xf32>
    %25 = math.absf %24 : vector<16x1xf32>
    %cst_17 = arith.constant 0.000000e+00 : f32
    %26 = vector.broadcast %cst_17 : f32 to vector<16x1xf32>
    %27 = arith.subf %26, %25 : vector<16x1xf32>
    %28 = math.exp %27 : vector<16x1xf32>
    %cst_18 = arith.constant 1.000000e+00 : f32
    %29 = vector.broadcast %cst_18 : f32 to vector<16x1xf32>
    %30 = arith.addf %29, %28 : vector<16x1xf32>
    %cst_19 = arith.constant 1.000000e+00 : f32
    %31 = vector.broadcast %cst_19 : f32 to vector<16x1xf32>
    %32 = arith.divf %31, %30 : vector<16x1xf32>
    %cst_20 = arith.constant 0.000000e+00 : f32
    %33 = vector.broadcast %cst_20 : f32 to vector<16x1xf32>
    %34 = arith.cmpf oge, %24, %33 : vector<16x1xf32>
    %35 = arith.mulf %28, %32 : vector<16x1xf32>
    %36 = arith.select %34, %32, %35 : vector<16x1xi1>, vector<16x1xf32>
    %c0_21 = arith.constant 0 : index
    %c0_22 = arith.constant 0 : index
    %37 = vector.load %arg8[%c0_21, %c0_22] : memref<16x1xf32, #tpu.memory_space<vmem>>, vector<16x1xf32>
    tpu.vector_store %arg8[%c0_21, %c0_22], %36 {strides = array<i32>} : memref<16x1xf32, #tpu.memory_space<vmem>>, vector<16x1xf32>,
    return
  }
  func.func @transform_0(%arg0: i32) -> (i32, i32) {
    %c0_i32 = arith.constant 0 : i32
    %c0_i32_0 = arith.constant 0 : i32
    return %arg0, %c0_i32 : i32, i32
  }
  func.func @transform_1(%arg0: i32) -> (i32, i32) {
    %c0_i32 = arith.constant 0 : i32
    %c0_i32_0 = arith.constant 0 : i32
    %c0_i32_1 = arith.constant 0 : i32
    return %c0_i32, %c0_i32_0 : i32, i32
  }
  func.func @transform_2(%arg0: i32) -> (i32, i32) {
    %c0_i32 = arith.constant 0 : i32
    %c0_i32_0 = arith.constant 0 : i32
    %c0_i32_1 = arith.constant 0 : i32
    return %c0_i32, %c0_i32_0 : i32, i32
  }
  func.func @transform_3(%arg0: i32) -> (i32, i32) {
    %c0_i32 = arith.constant 0 : i32
    %c0_i32_0 = arith.constant 0 : i32
    %c0_i32_1 = arith.constant 0 : i32
    return %c0_i32, %c0_i32_0 : i32, i32
  }
  func.func @transform_4(%arg0: i32) -> (i32, i32) {
    %c0_i32 = arith.constant 0 : i32
    %c0_i32_0 = arith.constant 0 : i32
    %c0_i32_1 = arith.constant 0 : i32
    return %c0_i32, %c0_i32_0 : i32, i32
  }
  func.func @transform_5(%arg0: i32) -> (i32, i32) {
    %c0_i32 = arith.constant 0 : i32
    %c0_i32_0 = arith.constant 0 : i32
    %c0_i32_1 = arith.constant 0 : i32
    return %c0_i32, %c0_i32_0 : i32, i32
  }
  func.func @transform_6(%arg0: i32) -> (i32, i32) {
    %c0_i32 = arith.constant 0 : i32
    %c0_i32_0 = arith.constant 0 : i32
    %c0_i32_1 = arith.constant 0 : i32
    return %c0_i32, %c0_i32_0 : i32, i32
  }
  func.func @transform_7(%arg0: i32) -> (i32, i32) {
    %c0_i32 = arith.constant 0 : i32
    %c0_i32_0 = arith.constant 0 : i32
    return %arg0, %c0_i32 : i32, i32
  }
}

module attributes {stable_mosaic.version = 11 : i64} {
  func.func @_adv_net_kernel(%arg0: i32, %arg1: memref<16x128xf32, #tpu.memory_space<vmem>>, %arg2: memref<128x128xbf16, #tpu.memory_space<vmem>>, %arg3: memref<1x128xf32, #tpu.memory_space<vmem>>, %arg4: memref<128x128xbf16, #tpu.memory_space<vmem>>, %arg5: memref<1x128xf32, #tpu.memory_space<vmem>>, %arg6: memref<1x128xf32, #tpu.memory_space<vmem>>, %arg7: memref<1x1xf32, #tpu.memory_space<vmem>>, %arg8: memref<16x1xf32, #tpu.memory_space<vmem>>) attributes {dimension_semantics = [#tpu.dimension_semantics<parallel>], iteration_bounds = array<i64: 1>, scalar_prefetch = 0 : i64, scratch_operands = 0 : i64, tpu.core_type = #tpu.core_type<tc>, window_params = [{transform_indices = @transform_0, window_bounds = array<i64: 16, 128>}, {pipeline_mode = #tpu.pipeline_mode<synchronous>, transform_indices = @transform_1, window_bounds = array<i64: 128, 128>}, {pipeline_mode = #tpu.pipeline_mode<synchronous>, transform_indices = @transform_2, window_bounds = array<i64: 1, 128>}, {pipeline_mode = #tpu.pipeline_mode<synchronous>, transform_indices = @transform_3, window_bounds = array<i64: 128, 128>}, {pipeline_mode = #tpu.pipeline_mode<synchronous>, transform_indices = @transform_4, window_bounds = array<i64: 1, 128>}, {pipeline_mode = #tpu.pipeline_mode<synchronous>, transform_indices = @transform_5, window_bounds = array<i64: 1, 128>}, {pipeline_mode = #tpu.pipeline_mode<synchronous>, transform_indices = @transform_6, window_bounds = array<i64: 1, 1>}, {transform_indices = @transform_7, window_bounds = array<i64: 16, 1>}]} {
    %c0 = arith.constant 0 : index
    %c0_0 = arith.constant 0 : index
    %0 = vector.load %arg1[%c0, %c0_0] : memref<16x128xf32, #tpu.memory_space<vmem>>, vector<16x128xf32>
    %1 = arith.truncf %0 : vector<16x128xf32> to vector<16x128xbf16>
    %c0_1 = arith.constant 0 : index
    %c0_2 = arith.constant 0 : index
    %2 = vector.load %arg2[%c0_1, %c0_2] : memref<128x128xbf16, #tpu.memory_space<vmem>>, vector<128x128xbf16>
    %cst = arith.constant dense<0.000000e+00> : vector<16x128xf32>
    %3 = tpu.matmul %1, %2, %cst {dimension_numbers = #tpu.dot_dimension_numbers<[1], [0], [0], [1], [0, 0, 1, 1], [], []>} : vector<16x128xbf16>, vector<128x128xbf16>, vector<16x128xf32> -> vector<16x128xf32>
    %c0_3 = arith.constant 0 : index
    %c0_4 = arith.constant 0 : index
    %4 = vector.load %arg3[%c0_3, %c0_4] : memref<1x128xf32, #tpu.memory_space<vmem>>, vector<1x128xf32>
    %5 = vector.broadcast %4 : vector<1x128xf32> to vector<16x128xf32>
    %6 = arith.addf %3, %5 : vector<16x128xf32>
    %cst_5 = arith.constant 0.000000e+00 : f32
    %7 = vector.broadcast %cst_5 : f32 to vector<16x128xf32>
    %8 = arith.maximumf %6, %7 : vector<16x128xf32>
    %9 = arith.truncf %8 : vector<16x128xf32> to vector<16x128xbf16>
    %c0_6 = arith.constant 0 : index
    %c0_7 = arith.constant 0 : index
    %10 = vector.load %arg4[%c0_6, %c0_7] : memref<128x128xbf16, #tpu.memory_space<vmem>>, vector<128x128xbf16>
    %cst_8 = arith.constant dense<0.000000e+00> : vector<16x128xf32>
    %11 = tpu.matmul %9, %10, %cst_8 {dimension_numbers = #tpu.dot_dimension_numbers<[1], [0], [0], [1], [0, 0, 1, 1], [], []>} : vector<16x128xbf16>, vector<128x128xbf16>, vector<16x128xf32> -> vector<16x128xf32>
    %c0_9 = arith.constant 0 : index
    %c0_10 = arith.constant 0 : index
    %12 = vector.load %arg5[%c0_9, %c0_10] : memref<1x128xf32, #tpu.memory_space<vmem>>, vector<1x128xf32>
    %13 = vector.broadcast %12 : vector<1x128xf32> to vector<16x128xf32>
    %14 = arith.addf %11, %13 : vector<16x128xf32>
    %cst_11 = arith.constant 0.000000e+00 : f32
    %15 = vector.broadcast %cst_11 : f32 to vector<16x128xf32>
    %16 = arith.maximumf %14, %15 : vector<16x128xf32>
    %c0_12 = arith.constant 0 : index
    %c0_13 = arith.constant 0 : index
    %17 = vector.load %arg6[%c0_12, %c0_13] : memref<1x128xf32, #tpu.memory_space<vmem>>, vector<1x128xf32>
    %18 = vector.broadcast %17 : vector<1x128xf32> to vector<16x128xf32>
    %19 = arith.mulf %16, %18 : vector<16x128xf32>
    %cst_14 = arith.constant dense<0.000000e+00> : vector<16xf32>
    %20 = vector.multi_reduction <add>, %19, %cst_14 [1] : vector<16x128xf32> to vector<16xf32>
    %21 = vector.shape_cast %20 : vector<16xf32> to vector<16x1xf32>
    %c0_15 = arith.constant 0 : index
    %c0_16 = arith.constant 0 : index
    %22 = vector.load %arg7[%c0_15, %c0_16] : memref<1x1xf32, #tpu.memory_space<vmem>>, vector<1x1xf32>
    %23 = vector.extract %22[0, 0] : f32 from vector<1x1xf32>
    %24 = vector.broadcast %23 : f32 to vector<16x1xf32>
    %25 = arith.addf %21, %24 : vector<16x1xf32>
    %26 = math.absf %25 : vector<16x1xf32>
    %cst_17 = arith.constant 0.000000e+00 : f32
    %27 = vector.broadcast %cst_17 : f32 to vector<16x1xf32>
    %28 = arith.subf %27, %26 : vector<16x1xf32>
    %29 = math.exp %28 : vector<16x1xf32>
    %cst_18 = arith.constant 1.000000e+00 : f32
    %30 = vector.broadcast %cst_18 : f32 to vector<16x1xf32>
    %31 = arith.addf %30, %29 : vector<16x1xf32>
    %cst_19 = arith.constant 1.000000e+00 : f32
    %32 = vector.broadcast %cst_19 : f32 to vector<16x1xf32>
    %33 = arith.divf %32, %31 : vector<16x1xf32>
    %cst_20 = arith.constant 0.000000e+00 : f32
    %34 = vector.broadcast %cst_20 : f32 to vector<16x1xf32>
    %35 = arith.cmpf oge, %25, %34 : vector<16x1xf32>
    %36 = arith.mulf %29, %33 : vector<16x1xf32>
    %37 = arith.select %35, %33, %36 : vector<16x1xi1>, vector<16x1xf32>
    %c0_21 = arith.constant 0 : index
    %c0_22 = arith.constant 0 : index
    %38 = vector.load %arg8[%c0_21, %c0_22] : memref<16x1xf32, #tpu.memory_space<vmem>>, vector<16x1xf32>
    tpu.vector_store %arg8[%c0_21, %c0_22], %37 {strides = array<i32>} : memref<16x1xf32, #tpu.memory_space<vmem>>, vector<16x1xf32>,
    return
  }
  func.func @transform_0(%arg0: i32) -> (i32, i32) {
    %c0_i32 = arith.constant 0 : i32
    %c0_i32_0 = arith.constant 0 : i32
    return %arg0, %c0_i32 : i32, i32
  }
  func.func @transform_1(%arg0: i32) -> (i32, i32) {
    %c0_i32 = arith.constant 0 : i32
    %c0_i32_0 = arith.constant 0 : i32
    %c0_i32_1 = arith.constant 0 : i32
    return %c0_i32, %c0_i32_0 : i32, i32
  }
  func.func @transform_2(%arg0: i32) -> (i32, i32) {
    %c0_i32 = arith.constant 0 : i32
    %c0_i32_0 = arith.constant 0 : i32
    %c0_i32_1 = arith.constant 0 : i32
    return %c0_i32, %c0_i32_0 : i32, i32
  }
  func.func @transform_3(%arg0: i32) -> (i32, i32) {
    %c0_i32 = arith.constant 0 : i32
    %c0_i32_0 = arith.constant 0 : i32
    %c0_i32_1 = arith.constant 0 : i32
    return %c0_i32, %c0_i32_0 : i32, i32
  }
  func.func @transform_4(%arg0: i32) -> (i32, i32) {
    %c0_i32 = arith.constant 0 : i32
    %c0_i32_0 = arith.constant 0 : i32
    %c0_i32_1 = arith.constant 0 : i32
    return %c0_i32, %c0_i32_0 : i32, i32
  }
  func.func @transform_5(%arg0: i32) -> (i32, i32) {
    %c0_i32 = arith.constant 0 : i32
    %c0_i32_0 = arith.constant 0 : i32
    %c0_i32_1 = arith.constant 0 : i32
    return %c0_i32, %c0_i32_0 : i32, i32
  }
  func.func @transform_6(%arg0: i32) -> (i32, i32) {
    %c0_i32 = arith.constant 0 : i32
    %c0_i32_0 = arith.constant 0 : i32
    %c0_i32_1 = arith.constant 0 : i32
    return %c0_i32, %c0_i32_0 : i32, i32
  }
  func.func @transform_7(%arg0: i32) -> (i32, i32) {
    %c0_i32 = arith.constant 0 : i32
    %c0_i32_0 = arith.constant 0 : i32
    return %arg0, %c0_i32 : i32, i32
  }
}

</mosaic_0001>

<bundles_post_ra>
// kernel: tpu_custom_call.1
= control target key start
LH: loop header
LB: loop body
LE: loop exit
PB: predicated region body
PF: predicated region fallthrough
CT: control target
= control target key end

     0   :  { %13 = vsyncpa [#allocation4], 0  ;;  %s636_s0 = inlined_call_operand.hbm [shape: f32[16,128], index: 0, kind: input, shape index: {}]   ;;  %s637_s1 = inlined_call_operand.hbm [shape: bf16[128,128], index: 1, kind: input, shape index: {}]   ;;  %s638_s2 = inlined_call_operand.vmem [shape: f32[1,128], index: 2, kind: input, shape index: {}]   ;;  %s639_s3 = inlined_call_operand.hbm [shape: bf16[128,128], index: 3, kind: input, shape index: {}]   ;;  %s640_s4 = inlined_call_operand.vmem [shape: f32[1,128], index: 4, kind: input, shape index: {}]   ;;  %s641_s5 = inlined_call_operand.vmem [shape: f32[1,128], index: 5, kind: input, shape index: {}]   ;;  %s642_s6 = inlined_call_operand.<no memory space> [shape: f32[1,1], index: 6, kind: input, shape index: {}]   ;;  %s643_s7 = inlined_call_operand.vmem [shape: f32[16,1], index: 7, kind: output, shape index: {}]  }
   0x1   :  { %14 = vsyncpa [#allocation6], 0  ;;  %s527_s24 = smov [#allocation5]   ;;  %s457_s28 = scalar_lea.hbm %s637_s1, 1024 }
   0x2   :  { %s32_s25 = sshll.u32 %s527_s24, 4  ;;  %p458_p0 = scmp.ne.s32.totalorder %s637_s1, %s457_s28  ;;  %s33_s25 = int_to_ptr.vmem [resolvable:$true] %s32_s25 }
   0x3   :  { %p461_p1 = scmp.lt.u32.totalorder %s457_s28, %s637_s1 }
   0x5   :  { %p463_p2 = pnand %p461_p1, %p458_p0 }
   0x7   :  { %466 = shalt.err (!%p463_p2)
}
   0x8   :  { %s467_s10 = scalar_lea.vmem %s33_s25, 1024  ;;  %p472_p4 = scmp.lt.s32.totalorder %s33_s25, %s33_s25 }
   0x9   :  { %p468_p3 = scmp.ne.s32.totalorder %s33_s25, %s467_s10  ;;  %p473_p5 = scmp.lt.s32.totalorder %s467_s10, %s467_s10 }
   0xb   :  { %p474_p6 = por %p473_p5, %p472_p4 }
   0xd   :  { %p475_p7 = pnand %p474_p6, %p468_p3 }
   0xf   :  { %478 = shalt.err (!%p475_p7)
}
  0x10   :  { %s528_s11 = smov 64   ;;  %s529_s12 = smov 4  }
  0x11   :  { %38 = dma.hbm_to_vmem [thread:$0]  %s637_s1, 1024, %s33_s25, [#allocation6], %s528_s11, %s528_s11, %s529_s12  }
  0x12   :  { %s530_s15 = smov [#allocation3]   ;;  %s479_s19 = scalar_lea.hbm %s636_s0, 256 }
  0x13   :  { %s20_s16 = sshll.u32 %s530_s15, 4  ;;  %p480_p8 = scmp.ne.s32.totalorder %s636_s0, %s479_s19  ;;  %s21_s16 = int_to_ptr.vmem [resolvable:$true] %s20_s16 }
  0x14   :  { %p483_p9 = scmp.lt.u32.totalorder %s479_s19, %s636_s0 }
  0x16   :  { %p485_p10 = pnand %p483_p9, %p480_p8 }
  0x18   :  { %488 = shalt.err (!%p485_p10)
}
  0x19   :  { %s489_s24 = scalar_lea.vmem %s21_s16, 256  ;;  %p494_p12 = scmp.lt.s32.totalorder %s21_s16, %s21_s16 }
  0x1a   :  { %p490_p11 = scmp.ne.s32.totalorder %s21_s16, %s489_s24  ;;  %p495_p13 = scmp.lt.s32.totalorder %s489_s24, %s489_s24 }
  0x1c   :  { %p496_p0 = por %p495_p13, %p494_p12 }
  0x1e   :  { %p497_p1 = pnand %p496_p0, %p490_p11 }
  0x20   :  { %500 = shalt.err (!%p497_p1)
}
  0x21   :  { %s531_s1 = smov 128   ;;  %s532_s25 = smov 8  }
  0x22   :  { %26 = dma.hbm_to_vmem [thread:$0]  %s636_s0, 256, %s21_s16, [#allocation4], %s531_s1, %s531_s1, %s532_s25  }
  0x23   :  { %s533_s28 = smov [#allocation7]   ;;  %s501_s9 = scalar_lea.hbm %s639_s3, 1024 }
  0x24   :  { %s46_s29 = sshll.u32 %s533_s28, 4  ;;  %p502_p2 = scmp.ne.s32.totalorder %s639_s3, %s501_s9  ;;  %s47_s29 = int_to_ptr.vmem [resolvable:$true] %s46_s29 }
  0x25   :  { %p505_p3 = scmp.lt.u32.totalorder %s501_s9, %s639_s3 }
  0x27   :  { %p507_p4 = pnand %p505_p3, %p502_p2 }
  0x29   :  { %510 = shalt.err (!%p507_p4)
}
  0x2a   :  { %s511_s17 = scalar_lea.vmem %s47_s29, 1024  ;;  %p516_p6 = scmp.lt.s32.totalorder %s47_s29, %s47_s29 }
  0x2b   :  { %p512_p5 = scmp.ne.s32.totalorder %s47_s29, %s511_s17  ;;  %p517_p7 = scmp.lt.s32.totalorder %s511_s17, %s511_s17 }
  0x2d   :  { %p518_p8 = por %p517_p7, %p516_p6 }
  0x2f   :  { %p519_p9 = pnand %p518_p8, %p512_p5 }
  0x31   :  { %522 = shalt.err (!%p519_p9)
}
  0x32   :  { %52 = dma.hbm_to_vmem [thread:$0]  %s639_s3, 1024, %s47_s29, [#allocation6], %s528_s11, %s528_s11, %s529_s12  }
  0x33   :  { %523 = dma.done.wait [#allocation4], 256  }
  0x34   :  { %524 = vsyncadd [#allocation4], 4294967040 }
  0x35   :  { %525 = dma.done.wait [#allocation6], 2048  }
  0x36   :  { %526 = vsyncadd [#allocation6], 4294965248  ;;  %v534_v0 = vmov 0.0   ;;  %vm535_vm0 = vmmov 0   ;;  %v433_v1 = vld [vmem:[#allocation5] sm:$0xff]   ;;  %v434_v2 = vld [vmem:[#allocation5 + $0x8] sm:$0xff]   ;;  %v315_v42 = vstv %s642_s6 }
  0x37   :  { %384 = vmatprep.subr.bf16.mxu0 %v534_v0  ;;  %400 = vmatprep.mubr.msk.bf16.mxu0 %vm535_vm0, %v534_v0  ;;  %v435_v3 = vld [vmem:[#allocation5 + $0x10] sm:$0xff]   ;;  %v441_v4 = vld [vmem:[#allocation7] sm:$0xff]   ;;  %v436_v5 = vld [vmem:[#allocation5 + $0x18] sm:$0xff]   ;;  %vm338_vm1 = vcmask 7168  }
  0x38   :  { %404 = vmatprep.subr.bf16.mxu1 %v534_v0  ;;  %420 = vmatprep.mubr.msk.bf16.mxu1 %vm535_vm0, %v534_v0  ;;  %v442_v6 = vld [vmem:[#allocation7 + $0x8] sm:$0xff]   ;;  %v437_v7 = vld [vmem:[#allocation5 + $0x20] sm:$0xff]   ;;  %v443_v8 = vld [vmem:[#allocation7 + $0x10] sm:$0xff]  }
  0x39   :  { %385 = vmatpush3.bf16.msra.mxu0 %v433_v1  ;;  %405 = vmatpush3.bf16.msra.mxu1 %v441_v4  ;;  %v438_v9 = vld [vmem:[#allocation5 + $0x28] sm:$0xff]   ;;  %v444_v10 = vld [vmem:[#allocation7 + $0x18] sm:$0xff]   ;;  %v439_v11 = vld [vmem:[#allocation5 + $0x30] sm:$0xff]  }
  0x3a   :  { %386 = vmatprep.subr.bf16.mxu0 %v534_v0  ;;  %406 = vmatprep.subr.bf16.mxu1 %v534_v0  ;;  %v445_v12 = vld [vmem:[#allocation7 + $0x20] sm:$0xff]   ;;  %v440_v13 = vld [vmem:[#allocation5 + $0x38] sm:$0xff]   ;;  %v69_v14 = vld [vmem:[#allocation3] sm:$0xff] }
  0x3b   :  { %v70_v15 = vld [vmem:[#allocation3 + $0x8] sm:$0xff]  ;;  %v446_v16 = vld [vmem:[#allocation7 + $0x28] sm:$0xff]   ;;  %v447_v18 = vld [vmem:[#allocation7 + $0x30] sm:$0xff]  }
  0x3c   :  { %v71_v17 = vpack.c.bf16 %v70_v15, %v69_v14  ;;  %v448_v19 = vld [vmem:[#allocation7 + $0x38] sm:$0xff]   ;;  %v347_v20 = vld [vmem:[%s638_s2] ss:$0 sm:$0xff] }
  0x3d   :  { %387 = vmatpush3.bf16.msra.mxu0 %v434_v2  ;;  %407 = vmatpush3.bf16.msra.mxu1 %v442_v6  ;;  %v356_v30 = vld [vmem:[%s640_s4] ss:$0 sm:$0xff] }
  0x3e   :  { %388 = vmatprep.subr.bf16.mxu0 %v534_v0  ;;  %408 = vmatprep.subr.bf16.mxu1 %v534_v0  ;;  %v365_v35 = vld [vmem:[%s641_s5] ss:$0 sm:$0xff] }
  0x41   :  { %389 = vmatpush3.bf16.msra.mxu0 %v435_v3  ;;  %409 = vmatpush3.bf16.msra.mxu1 %v443_v8 }
  0x42   :  { %390 = vmatprep.subr.bf16.mxu0 %v534_v0  ;;  %410 = vmatprep.subr.bf16.mxu1 %v534_v0 }
  0x45   :  { %391 = vmatpush3.bf16.msra.mxu0 %v436_v5  ;;  %411 = vmatpush3.bf16.msra.mxu1 %v444_v10 }
  0x46   :  { %392 = vmatprep.subr.bf16.mxu0 %v534_v0  ;;  %412 = vmatprep.subr.bf16.mxu1 %v534_v0 }
  0x49   :  { %393 = vmatpush3.bf16.msra.mxu0 %v437_v7  ;;  %413 = vmatpush3.bf16.msra.mxu1 %v445_v12 }
  0x4a   :  { %394 = vmatprep.subr.bf16.mxu0 %v534_v0  ;;  %414 = vmatprep.subr.bf16.mxu1 %v534_v0 }
  0x4d   :  { %395 = vmatpush3.bf16.msra.mxu0 %v438_v9  ;;  %415 = vmatpush3.bf16.msra.mxu1 %v446_v16 }
  0x4e   :  { %396 = vmatprep.subr.bf16.mxu0 %v534_v0  ;;  %416 = vmatprep.subr.bf16.mxu1 %v534_v0 }
  0x51   :  { %397 = vmatpush3.bf16.msra.mxu0 %v439_v11  ;;  %417 = vmatpush3.bf16.msra.mxu1 %v447_v18 }
  0x52   :  { %398 = vmatprep.subr.bf16.mxu0 %v534_v0  ;;  %418 = vmatprep.subr.bf16.mxu1 %v534_v0 }
  0x55   :  { %399 = vmatpush3.bf16.msra.mxu0 %v440_v13  ;;  %419 = vmatpush3.bf16.msra.mxu1 %v448_v19 }
  0x58   :  { %401 = vmatmul.mubr.bf16.vlgmr.msra.gmra.mrb[0].mxu0 %v71_v17 }
 0x12b   :  { %v177_v21 = vpop.f32.mrb[0].mxu0 }
 0x12c   :  { %v178_v22 = vadd.f32 %v347_v20, %v177_v21  ;;  %v402_v23 = vpop.f32.mrb[1].mxu0 }
 0x12d   :  { %v180_v24 = vpop.f32.mrb[2].mxu0 }
 0x12e   :  { %v181_v25 = vadd.f32 %v347_v20, %v180_v24  ;;  %v403_v26 = vpop.f32.mrb[3].mxu0  ;;  %v184_v27 = vmax.f32 %v178_v22, 0.0 }
 0x130   :  { %v185_v28 = vmax.f32 %v181_v25, 0.0 }
 0x132   :  { %v186_v29 = vpack.c.bf16 %v185_v28, %v184_v27 }
 0x134   :  { %421 = vmatmul.mubr.bf16.vlgmr.msra.gmra.mrb[0].mxu1 %v186_v29 }
 0x207   :  { %v292_v31 = vpop.f32.mrb[0].mxu1 }
 0x208   :  { %v293_v32 = vadd.f32 %v356_v30, %v292_v31  ;;  %v422_v33 = vpop.f32.mrb[1].mxu1 }
 0x209   :  { %v295_v34 = vpop.f32.mrb[2].mxu1 }
 0x20a   :  { %v299_v36 = vmax.f32 %v293_v32, 0.0  ;;  %v296_v37 = vadd.f32 %v356_v30, %v295_v34  ;;  %v423_v38 = vpop.f32.mrb[3].mxu1 }
 0x20c   :  { %v300_v39 = vmax.f32 %v296_v37, 0.0  ;;  %v308_v40 = vmul.f32 %v365_v35, %v299_v36 }
 0x20e   :  { %310 = vadd.xlane.f32.xlu0 %v308_v40  ;;  %v309_v41 = vmul.f32 %v365_v35, %v300_v39 }
 0x212   :  { %312 = vadd.xlane.f32.xlu0 %v309_v41 }
 0x29b   :  { %v311_v43 = vpop.xlane.xlu0 %310 }
 0x29c   :  { %v316_v44 = vadd.f32 %v315_v42, %v311_v43 }
 0x29e   :  { %v318_v45 = vand.u32 2147483647, %v316_v44  ;;  %vm332_vm2 = vcmp.ge.f32.partialorder %v316_v44, 0.0 }
 0x29f   :  { %v313_v46 = vpop.xlane.xlu0 %312 }
 0x2a0   :  { %v320_v47 = vsub.f32 0.0, %v318_v45  ;;  %v317_v48 = vadd.f32 %v315_v42, %v313_v46 }
 0x2a2   :  { %v322_v49 = vmul.f32 1.442695, %v320_v47  ;;  %v319_v50 = vand.u32 2147483647, %v317_v48  ;;  %vm333_vm3 = vcmp.ge.f32.partialorder %v317_v48, 0.0 }
 0x2a4   :  { %449 = vpow2.f32 %v322_v49  ;;  %v321_v51 = vsub.f32 0.0, %v319_v50 }
 0x2a6   :  { %v324_v52 = vmul.f32 1.442695, %v321_v51 }
 0x2a8   :  { %451 = vpow2.f32 %v324_v52 }
 0x2ae   :  { %v450_v53 = vpop.eup %449 }
 0x2af   :  { %v326_v54 = vadd.f32 1.0, %v450_v53 }
 0x2b1   :  { %453 = vrcp.f32 %v326_v54 }
 0x2b2   :  { %v452_v55 = vpop.eup %451 }
 0x2b3   :  { %v327_v56 = vadd.f32 1.0, %v452_v55 }
 0x2b5   :  { %455 = vrcp.f32 %v327_v56 }
 0x2bb   :  { %v454_v57 = vpop.eup %453 }
 0x2bc   :  { %v334_v58 = vmul.f32 %v454_v57, %v450_v53 }
 0x2be   :  { %v336_v59 = vsel %vm332_vm2, %v454_v57, %v334_v58 }
 0x2bf   :  { %v456_v60 = vpop.eup %455  ;;  %339 = vst.msk [vmem:[%s643_s7] sm:$0xff] %vm338_vm1, %v336_v59 }
 0x2c0   :  { %v335_v61 = vmul.f32 %v456_v60, %v452_v55 }
 0x2c2   :  { %v337_v62 = vsel %vm333_vm3, %v456_v60, %v335_v61 }
 0x2c3   :  { %340 = vst.msk [vmem:[%s643_s7 + $0x8] sm:$0xff] %vm338_vm1, %v337_v62 }
 0x2c4   :  { %345 = vsyncpa [#allocation4], 1 }
 0x2c5   :  { %346 = vsyncpa [#allocation6], 1 }

// kernel: tpu_custom_call.1
= control target key start
LH: loop header
LB: loop body
LE: loop exit
PB: predicated region body
PF: predicated region fallthrough
CT: control target
= control target key end

     0   :  { %s640_s0 = inlined_call_operand.hbm [shape: f32[16,128], index: 0, kind: input, shape index: {}]   ;;  %s641_s1 = inlined_call_operand.hbm [shape: bf16[128,128], index: 1, kind: input, shape index: {}]   ;;  %s642_s2 = inlined_call_operand.vmem [shape: f32[1,128], index: 2, kind: input, shape index: {}]   ;;  %s643_s3 = inlined_call_operand.hbm [shape: bf16[128,128], index: 3, kind: input, shape index: {}]   ;;  %s644_s4 = inlined_call_operand.vmem [shape: f32[1,128], index: 4, kind: input, shape index: {}]   ;;  %s645_s5 = inlined_call_operand.vmem [shape: f32[1,128], index: 5, kind: input, shape index: {}]   ;;  %s646_s6 = inlined_call_operand.<no memory space> [shape: f32[1,1], index: 6, kind: input, shape index: {}]   ;;  %s647_s7 = inlined_call_operand.vmem [shape: f32[16,1], index: 7, kind: output, shape index: {}]  }
   0x1   :  { %v12_v0 = vstv %s646_s6 }
   0x2   :  { %13 = vst [vmem:[#allocation2] sm:$0x1] %v12_v0 }
   0x3   :  { %14 = vsyncpa [#allocation4], 0 }
   0x4   :  { %15 = vsyncpa [#allocation6], 0  ;;  %s531_s26 = smov [#allocation5]   ;;  %s461_s30 = scalar_lea.hbm %s641_s1, 1024 }
   0x5   :  { %s33_s27 = sshll.u32 %s531_s26, 4  ;;  %p462_p0 = scmp.ne.s32.totalorder %s641_s1, %s461_s30  ;;  %s34_s27 = int_to_ptr.vmem [resolvable:$true] %s33_s27 }
   0x6   :  { %p465_p1 = scmp.lt.u32.totalorder %s461_s30, %s641_s1 }
   0x8   :  { %p467_p2 = pnand %p465_p1, %p462_p0 }
   0xa   :  { %470 = shalt.err (!%p467_p2)
}
   0xb   :  { %s471_s6 = scalar_lea.vmem %s34_s27, 1024  ;;  %p476_p4 = scmp.lt.s32.totalorder %s34_s27, %s34_s27 }
   0xc   :  { %p472_p3 = scmp.ne.s32.totalorder %s34_s27, %s471_s6  ;;  %p477_p5 = scmp.lt.s32.totalorder %s471_s6, %s471_s6 }
   0xe   :  { %p478_p6 = por %p477_p5, %p476_p4 }
  0x10   :  { %p479_p7 = pnand %p478_p6, %p472_p3 }
  0x12   :  { %482 = shalt.err (!%p479_p7)
}
  0x13   :  { %s532_s12 = smov 64   ;;  %s533_s13 = smov 4  }
  0x14   :  { %39 = dma.hbm_to_vmem [thread:$0]  %s641_s1, 1024, %s34_s27, [#allocation6], %s532_s12, %s532_s12, %s533_s13  }
  0x15   :  { %s534_s16 = smov [#allocation3]   ;;  %s483_s20 = scalar_lea.hbm %s640_s0, 256 }
  0x16   :  { %s21_s17 = sshll.u32 %s534_s16, 4  ;;  %p484_p8 = scmp.ne.s32.totalorder %s640_s0, %s483_s20  ;;  %s22_s17 = int_to_ptr.vmem [resolvable:$true] %s21_s17 }
  0x17   :  { %p487_p9 = scmp.lt.u32.totalorder %s483_s20, %s640_s0 }
  0x19   :  { %p489_p10 = pnand %p487_p9, %p484_p8 }
  0x1b   :  { %492 = shalt.err (!%p489_p10)
}
  0x1c   :  { %s493_s25 = scalar_lea.vmem %s22_s17, 256  ;;  %p498_p12 = scmp.lt.s32.totalorder %s22_s17, %s22_s17 }
  0x1d   :  { %p494_p11 = scmp.ne.s32.totalorder %s22_s17, %s493_s25  ;;  %p499_p13 = scmp.lt.s32.totalorder %s493_s25, %s493_s25 }
  0x1f   :  { %p500_p0 = por %p499_p13, %p498_p12 }
  0x21   :  { %p501_p1 = pnand %p500_p0, %p494_p11 }
  0x23   :  { %504 = shalt.err (!%p501_p1)
}
  0x24   :  { %s535_s1 = smov 128   ;;  %s536_s26 = smov 8  }
  0x25   :  { %27 = dma.hbm_to_vmem [thread:$0]  %s640_s0, 256, %s22_s17, [#allocation4], %s535_s1, %s535_s1, %s536_s26  }
  0x26   :  { %s537_s29 = smov [#allocation7]   ;;  %s505_s10 = scalar_lea.hbm %s643_s3, 1024 }
  0x27   :  { %s47_s30 = sshll.u32 %s537_s29, 4  ;;  %p506_p2 = scmp.ne.s32.totalorder %s643_s3, %s505_s10  ;;  %s48_s30 = int_to_ptr.vmem [resolvable:$true] %s47_s30 }
  0x28   :  { %p509_p3 = scmp.lt.u32.totalorder %s505_s10, %s643_s3 }
  0x2a   :  { %p511_p4 = pnand %p509_p3, %p506_p2 }
  0x2c   :  { %514 = shalt.err (!%p511_p4)
}
  0x2d   :  { %s515_s16 = scalar_lea.vmem %s48_s30, 1024  ;;  %p520_p6 = scmp.lt.s32.totalorder %s48_s30, %s48_s30 }
  0x2e   :  { %p516_p5 = scmp.ne.s32.totalorder %s48_s30, %s515_s16  ;;  %p521_p7 = scmp.lt.s32.totalorder %s515_s16, %s515_s16 }
  0x30   :  { %p522_p8 = por %p521_p7, %p520_p6 }
  0x32   :  { %p523_p9 = pnand %p522_p8, %p516_p5 }
  0x34   :  { %526 = shalt.err (!%p523_p9)
}
  0x35   :  { %53 = dma.hbm_to_vmem [thread:$0]  %s643_s3, 1024, %s48_s30, [#allocation6], %s532_s12, %s532_s12, %s533_s13  }
  0x36   :  { %527 = dma.done.wait [#allocation4], 256  }
  0x37   :  { %528 = vsyncadd [#allocation4], 4294967040 }
  0x38   :  { %529 = dma.done.wait [#allocation6], 2048  }
  0x39   :  { %530 = vsyncadd [#allocation6], 4294965248  ;;  %v538_v1 = vmov 0.0   ;;  %vm539_vm0 = vmmov 0   ;;  %v437_v2 = vld [vmem:[#allocation5] sm:$0xff]   ;;  %v438_v3 = vld [vmem:[#allocation5 + $0x8] sm:$0xff]  }
  0x3a   :  { %386 = vmatprep.subr.bf16.mxu0 %v538_v1  ;;  %402 = vmatprep.mubr.msk.bf16.mxu0 %vm539_vm0, %v538_v1  ;;  %v439_v4 = vld [vmem:[#allocation5 + $0x10] sm:$0xff]   ;;  %v445_v5 = vld [vmem:[#allocation7] sm:$0xff]   ;;  %v440_v6 = vld [vmem:[#allocation5 + $0x18] sm:$0xff]   ;;  %vm340_vm1 = vcmask 7168  }
  0x3b   :  { %406 = vmatprep.subr.bf16.mxu1 %v538_v1  ;;  %422 = vmatprep.mubr.msk.bf16.mxu1 %vm539_vm0, %v538_v1  ;;  %v446_v7 = vld [vmem:[#allocation7 + $0x8] sm:$0xff]   ;;  %v441_v8 = vld [vmem:[#allocation5 + $0x20] sm:$0xff]   ;;  %v447_v9 = vld [vmem:[#allocation7 + $0x10] sm:$0xff]  }
  0x3c   :  { %387 = vmatpush3.bf16.msra.mxu0 %v437_v2  ;;  %407 = vmatpush3.bf16.msra.mxu1 %v445_v5  ;;  %v442_v10 = vld [vmem:[#allocation5 + $0x28] sm:$0xff]   ;;  %v448_v11 = vld [vmem:[#allocation7 + $0x18] sm:$0xff]   ;;  %v443_v12 = vld [vmem:[#allocation5 + $0x30] sm:$0xff]  }
  0x3d   :  { %388 = vmatprep.subr.bf16.mxu0 %v538_v1  ;;  %408 = vmatprep.subr.bf16.mxu1 %v538_v1  ;;  %v449_v13 = vld [vmem:[#allocation7 + $0x20] sm:$0xff]   ;;  %v444_v14 = vld [vmem:[#allocation5 + $0x38] sm:$0xff]   ;;  %v70_v15 = vld [vmem:[#allocation3] sm:$0xff] }
  0x3e   :  { %v71_v16 = vld [vmem:[#allocation3 + $0x8] sm:$0xff]  ;;  %v450_v17 = vld [vmem:[#allocation7 + $0x28] sm:$0xff]   ;;  %v451_v19 = vld [vmem:[#allocation7 + $0x30] sm:$0xff]  }
  0x3f   :  { %v72_v18 = vpack.c.bf16 %v71_v16, %v70_v15  ;;  %v452_v20 = vld [vmem:[#allocation7 + $0x38] sm:$0xff]   ;;  %v349_v21 = vld [vmem:[%s642_s2] ss:$0 sm:$0xff] }
  0x40   :  { %389 = vmatpush3.bf16.msra.mxu0 %v438_v3  ;;  %409 = vmatpush3.bf16.msra.mxu1 %v446_v7  ;;  %v315_v31 = vld [vmem:[#allocation2] sm:$0x1] }
  0x41   :  { %390 = vmatprep.subr.bf16.mxu0 %v538_v1  ;;  %410 = vmatprep.subr.bf16.mxu1 %v538_v1  ;;  %426 = vpush %v315_v31  ;;  %v358_v32 = vld [vmem:[%s644_s4] ss:$0 sm:$0xff] }
  0x42   :  { %v367_v37 = vld [vmem:[%s645_s5] ss:$0 sm:$0xff] }
  0x44   :  { %391 = vmatpush3.bf16.msra.mxu0 %v439_v4  ;;  %411 = vmatpush3.bf16.msra.mxu1 %v447_v9 }
  0x45   :  { %392 = vmatprep.subr.bf16.mxu0 %v538_v1  ;;  %412 = vmatprep.subr.bf16.mxu1 %v538_v1 }
  0x48   :  { %393 = vmatpush3.bf16.msra.mxu0 %v440_v6  ;;  %413 = vmatpush3.bf16.msra.mxu1 %v448_v11 }
  0x49   :  { %394 = vmatprep.subr.bf16.mxu0 %v538_v1  ;;  %414 = vmatprep.subr.bf16.mxu1 %v538_v1 }
  0x4c   :  { %395 = vmatpush3.bf16.msra.mxu0 %v441_v8  ;;  %415 = vmatpush3.bf16.msra.mxu1 %v449_v13 }
  0x4d   :  { %396 = vmatprep.subr.bf16.mxu0 %v538_v1  ;;  %416 = vmatprep.subr.bf16.mxu1 %v538_v1 }
  0x50   :  { %397 = vmatpush3.bf16.msra.mxu0 %v442_v10  ;;  %417 = vmatpush3.bf16.msra.mxu1 %v450_v17 }
  0x51   :  { %398 = vmatprep.subr.bf16.mxu0 %v538_v1  ;;  %418 = vmatprep.subr.bf16.mxu1 %v538_v1 }
  0x54   :  { %399 = vmatpush3.bf16.msra.mxu0 %v443_v12  ;;  %419 = vmatpush3.bf16.msra.mxu1 %v451_v19 }
  0x55   :  { %400 = vmatprep.subr.bf16.mxu0 %v538_v1  ;;  %420 = vmatprep.subr.bf16.mxu1 %v538_v1 }
  0x58   :  { %401 = vmatpush3.bf16.msra.mxu0 %v444_v14  ;;  %421 = vmatpush3.bf16.msra.mxu1 %v452_v20 }
  0x5b   :  { %403 = vmatmul.mubr.bf16.vlgmr.msra.gmra.mrb[0].mxu0 %v72_v18 }
  0x72   :  { %s427_s20 = spop %426 }
  0x73   :  { %v317_v44 = vstv %s427_s20 }
 0x12e   :  { %v178_v22 = vpop.f32.mrb[0].mxu0 }
 0x12f   :  { %v179_v23 = vadd.f32 %v349_v21, %v178_v22  ;;  %v404_v24 = vpop.f32.mrb[1].mxu0 }
 0x130   :  { %v181_v25 = vpop.f32.mrb[2].mxu0 }
 0x131   :  { %v182_v26 = vadd.f32 %v349_v21, %v181_v25  ;;  %v405_v27 = vpop.f32.mrb[3].mxu0  ;;  %v185_v28 = vmax.f32 %v179_v23, 0.0 }
 0x133   :  { %v186_v29 = vmax.f32 %v182_v26, 0.0 }
 0x135   :  { %v187_v30 = vpack.c.bf16 %v186_v29, %v185_v28 }
 0x137   :  { %423 = vmatmul.mubr.bf16.vlgmr.msra.gmra.mrb[0].mxu1 %v187_v30 }
 0x20a   :  { %v293_v33 = vpop.f32.mrb[0].mxu1 }
 0x20b   :  { %v294_v34 = vadd.f32 %v358_v32, %v293_v33  ;;  %v424_v35 = vpop.f32.mrb[1].mxu1 }
 0x20c   :  { %v296_v36 = vpop.f32.mrb[2].mxu1 }
 0x20d   :  { %v300_v38 = vmax.f32 %v294_v34, 0.0  ;;  %v297_v39 = vadd.f32 %v358_v32, %v296_v36  ;;  %v425_v40 = vpop.f32.mrb[3].mxu1 }
 0x20f   :  { %v301_v41 = vmax.f32 %v297_v39, 0.0  ;;  %v309_v42 = vmul.f32 %v367_v37, %v300_v38 }
 0x211   :  { %311 = vadd.xlane.f32.xlu0 %v309_v42  ;;  %v310_v43 = vmul.f32 %v367_v37, %v301_v41 }
 0x215   :  { %313 = vadd.xlane.f32.xlu0 %v310_v43 }
 0x29e   :  { %v312_v45 = vpop.xlane.xlu0 %311 }
 0x29f   :  { %v318_v46 = vadd.f32 %v317_v44, %v312_v45 }
 0x2a1   :  { %v320_v47 = vand.u32 2147483647, %v318_v46  ;;  %vm334_vm2 = vcmp.ge.f32.partialorder %v318_v46, 0.0 }
 0x2a2   :  { %v314_v48 = vpop.xlane.xlu0 %313 }
 0x2a3   :  { %v322_v49 = vsub.f32 0.0, %v320_v47  ;;  %v319_v50 = vadd.f32 %v317_v44, %v314_v48 }
 0x2a5   :  { %v324_v51 = vmul.f32 1.442695, %v322_v49  ;;  %v321_v52 = vand.u32 2147483647, %v319_v50  ;;  %vm335_vm3 = vcmp.ge.f32.partialorder %v319_v50, 0.0 }
 0x2a7   :  { %453 = vpow2.f32 %v324_v51  ;;  %v323_v53 = vsub.f32 0.0, %v321_v52 }
 0x2a9   :  { %v326_v54 = vmul.f32 1.442695, %v323_v53 }
 0x2ab   :  { %455 = vpow2.f32 %v326_v54 }
 0x2b1   :  { %v454_v55 = vpop.eup %453 }
 0x2b2   :  { %v328_v56 = vadd.f32 1.0, %v454_v55 }
 0x2b4   :  { %457 = vrcp.f32 %v328_v56 }
 0x2b5   :  { %v456_v57 = vpop.eup %455 }
 0x2b6   :  { %v329_v58 = vadd.f32 1.0, %v456_v57 }
 0x2b8   :  { %459 = vrcp.f32 %v329_v58 }
 0x2be   :  { %v458_v59 = vpop.eup %457 }
 0x2bf   :  { %v336_v60 = vmul.f32 %v458_v59, %v454_v55 }
 0x2c1   :  { %v338_v61 = vsel %vm334_vm2, %v458_v59, %v336_v60 }
 0x2c2   :  { %v460_v62 = vpop.eup %459  ;;  %341 = vst.msk [vmem:[%s647_s7] sm:$0xff] %vm340_vm1, %v338_v61 }
 0x2c3   :  { %v337_v63 = vmul.f32 %v460_v62, %v456_v57 }
 0x2c5   :  { %v339_v0 = vsel %vm335_vm3, %v460_v62, %v337_v63 }
 0x2c6   :  { %342 = vst.msk [vmem:[%s647_s7 + $0x8] sm:$0xff] %vm340_vm1, %v339_v0 }
 0x2c7   :  { %347 = vsyncpa [#allocation4], 1 }
 0x2c8   :  { %348 = vsyncpa [#allocation6], 1 }

</bundles_post_ra>
